<compile_context>
chip_gen: v7x
topology: tpu7x:2x2x1
jax: 0.10.0
libtpu: 0.0.40
codegen_flags: <defaults>
</compile_context>

<pallas_src>
import math

import jax
import jax.numpy as jnp
from jax import lax
from jax.experimental import pallas as pl
from jax.experimental.pallas import tpu as pltpu


# -----------------------------------------------------------------------------
# Kernel
# -----------------------------------------------------------------------------
def _arcface_kernel(cos_m, sin_m, th, mm, s, easy_margin, precision):
    """Returns a kernel closed over the scalar hyper-parameters."""

    def kernel(xn_ref, wn_ref, label_ref, out_ref):
        j = pl.program_id(0)  # class-tile index (outer grid axis)

        x_n = xn_ref[...]     # (tm, Din), pre-normalized, compute dtype (bf16)
        w_n = wn_ref[...]     # (tn, Din), pre-normalized, compute dtype (bf16)

        # cosine = x_n @ w_n.T, contracting on Din (no transpose materialized).
        cosine = lax.dot_general(
            x_n, w_n,
            dimension_numbers=(((1,), (1,)), ((), ())),
            preferred_element_type=jnp.float32,
            precision=precision)                                    # (tm, tn) f32

        # 1 - c^2 can never exceed 1 for real c; only the lower clamp is needed
        # (|cosine| may exceed 1 by a rounding ulp -> NaN without it).
        sine = jnp.sqrt(jnp.maximum(1.0 - cosine * cosine, 0.0))
        phi = cosine * cos_m - sine * sin_m
        if easy_margin:
            phi = jnp.where(cosine > 0.0, phi, cosine)
        else:
            phi = jnp.where(cosine > th, phi, cosine - mm)

        # One-hot select: column ids (offset by the class-tile origin) vs label.
        tm, tn = out_ref.shape
        col_ids = lax.broadcasted_iota(jnp.int32, (tm, tn), 1) + j * tn
        label = label_ref[...]                                      # (tm, 1) int32
        out_ref[...] = (jnp.where(col_ids == label, phi, cosine) * s).astype(
            out_ref.dtype)

    return kernel


# -----------------------------------------------------------------------------
# Tiling helpers (Din- and generation-aware)
# -----------------------------------------------------------------------------
def _vmem_capacity_bytes():
    try:
        return int(pltpu.get_tpu_info().vmem_capacity_bytes)
    except Exception:
        return 64 * 1024 * 1024  # conservative fallback (v7x per-TC VMEM)


def _tile_vmem_bytes(tm, tn, din, in_bytes, out_bytes):
    # Double-buffered inputs/outputs under BlockSpec auto-pipelining.
    w = 2 * tn * din * in_bytes
    x = 2 * tm * din * in_bytes
    o = 2 * tm * tn * out_bytes
    lbl = 2 * tm * 128 * 4  # (tm, 1) int32 block, lane-padded
    return w + x + o + lbl


def _pick_tiles(batch, din, dout, in_bytes, out_bytes, budget):
    # Batch tile: keep the whole batch resident when possible (x is small), so
    # the weight matrix is never re-streamed across batch tiles.
    tm = batch if batch <= 512 else 512
    # Class tile: lane-dense and 256-aligned (v6e/v7x MXU is 256x256; 128 also
    # fine on v5e), as large as the VMEM budget allows to amortize per-step
    # overhead and keep the weight DMA pipeline full.
    if dout <= 256:
        return tm, dout
    tn = 128
    for cand in (256, 512, 1024, 2048, 4096):
        if cand > dout:
            break
        if _tile_vmem_bytes(tm, cand, din, in_bytes, out_bytes) <= budget:
            tn = cand
    return tm, tn


# -----------------------------------------------------------------------------
# Wrapper
# -----------------------------------------------------------------------------
def _l2_normalize(v):
    v = v.astype(jnp.float32)
    # F.normalize: v / max(||v||, 1e-12) == v * rsqrt(max(||v||^2, 1e-24))
    return v * lax.rsqrt(jnp.maximum(jnp.sum(v * v, axis=-1, keepdims=True),
                                     1e-24))


def arc_margin_product(x, weight, label, *, s=30.0, m=0.5, easy_margin=False,
                       compute_dtype=jnp.bfloat16, out_dtype=jnp.float32,
                       tm=None, tn=None):
    """Pallas implementation of ArcMarginProduct.forward.

    x:      (B, in_features) float
    weight: (out_features, in_features) float
    label:  (B,) integer class ids
    returns (B, out_features) out_dtype (float32 by default, like PyTorch)
    """
    B, din = x.shape
    dout, din_w = weight.shape
    assert din == din_w

    cos_m = math.cos(m)
    sin_m = math.sin(m)
    th = math.cos(math.pi - m)
    mm = math.sin(math.pi - m) * m

    # Pre-normalize once in f32 (tiny XLA ops), feed the kernel MXU-ready
    # operands. bf16 (default) halves the weight HBM stream and runs the MXU at
    # native rate; pass compute_dtype=jnp.float32 for exact f32 semantics.
    x_n = _l2_normalize(x).astype(compute_dtype)
    w_n = _l2_normalize(weight).astype(compute_dtype)
    label2d = label.reshape(B, 1).astype(jnp.int32)

    in_bytes = jnp.dtype(compute_dtype).itemsize
    out_bytes = jnp.dtype(out_dtype).itemsize
    vmem_cap = _vmem_capacity_bytes()
    budget = int(vmem_cap * 0.45)  # headroom for compiler scratch / vregs

    tm_d, tn_d = _pick_tiles(B, din, dout, in_bytes, out_bytes, budget)
    tm = tm_d if tm is None else tm
    tn = tn_d if tn is None else tn

    used = _tile_vmem_bytes(tm, tn, din, in_bytes, out_bytes)
    vmem_limit = min(int(vmem_cap * 0.75), max(used + (16 << 20), 32 << 20))

    # Explicit precision for the f32 path (review correctness concern); bf16
    # operands are already exact single-pass MXU with f32 accumulation.
    precision = (lax.Precision.HIGHEST
                 if jnp.dtype(compute_dtype) == jnp.dtype(jnp.float32) else None)
    kernel = _arcface_kernel(cos_m, sin_m, th, mm, s, easy_margin, precision)

    # Class tiles on the OUTER axis: the weight tile stays resident while the
    # inner batch axis iterates, so weight is streamed from HBM exactly once.
    grid = (pl.cdiv(dout, tn), pl.cdiv(B, tm))

    grid_spec = pltpu.PrefetchScalarGridSpec(
        num_scalar_prefetch=0,
        grid=grid,
        in_specs=[
            pl.BlockSpec((tm, din), lambda j, i: (i, 0)),   # x_n: streamed over batch
            pl.BlockSpec((tn, din), lambda j, i: (j, 0)),   # w_n: resident over batch
            pl.BlockSpec((tm, 1), lambda j, i: (i, 0)),     # labels per batch tile
        ],
        out_specs=pl.BlockSpec((tm, tn), lambda j, i: (i, j)),
    )

    return pl.pallas_call(
        kernel,
        out_shape=jax.ShapeDtypeStruct((B, dout), out_dtype),
        grid_spec=grid_spec,
        compiler_params=pltpu.CompilerParams(
            dimension_semantics=("parallel", "parallel"),
            vmem_limit_bytes=vmem_limit),
    )(x_n, w_n, label2d)


# -----------------------------------------------------------------------------
# Pure-JAX reference mirroring the PyTorch forward, for verification.
# -----------------------------------------------------------------------------
def _reference(x, weight, label, *, s=30.0, m=0.5, easy_margin=False,
               compute_dtype=jnp.float32):
    cos_m, sin_m = math.cos(m), math.sin(m)
    th, mm = math.cos(math.pi - m), math.sin(math.pi - m) * m
    precision = (lax.Precision.HIGHEST
                 if jnp.dtype(compute_dtype) == jnp.dtype(jnp.float32) else None)
    x_n = _l2_normalize(x).astype(compute_dtype)
    w_n = _l2_normalize(weight).astype(compute_dtype)
    cosine = lax.dot_general(
        x_n, w_n, dimension_numbers=(((1,), (1,)), ((), ())),
        preferred_element_type=jnp.float32, precision=precision)
    sine = jnp.sqrt(jnp.maximum(1.0 - cosine ** 2, 0.0))
    phi = cosine * cos_m - sine * sin_m
    if easy_margin:
        phi = jnp.where(cosine > 0, phi, cosine)
    else:
        phi = jnp.where(cosine > th, phi, cosine - mm)
    one_hot = jax.nn.one_hot(label, cosine.shape[1], dtype=cosine.dtype)
    return (one_hot * phi + (1.0 - one_hot) * cosine) * s


if __name__ == "__main__":
    # Small shapes, but large enough to exercise the tiled class axis.
    B, IN_FEATURES, OUT_FEATURES = 8, 128, 256
    S, M = 30.0, 0.5

    key = jax.random.PRNGKey(0)
    kx, kw, kl = jax.random.split(key, 3)

    x = jax.random.normal(kx, (B, IN_FEATURES), dtype=jnp.float32)

    # Xavier-uniform init for weight (out_features, in_features), deterministic.
    bound = math.sqrt(6.0 / (IN_FEATURES + OUT_FEATURES))
    weight = jax.random.uniform(
        kw, (OUT_FEATURES, IN_FEATURES), dtype=jnp.float32,
        minval=-bound, maxval=bound)
    label = jax.random.randint(kl, (B,), 0, OUT_FEATURES, dtype=jnp.int32)

    # Default bf16-operand path; tn=128 forces a tiled class axis (grid (2, 1)),
    # exercising the iota tile-offset and the resident-weight pipelining.
    out = arc_margin_product(x, weight, label, s=S, m=M, easy_margin=False,
                             tn=128)
    out = jax.block_until_ready(out)
    ref = _reference(x, weight, label, s=S, m=M, easy_margin=False,
                     compute_dtype=jnp.bfloat16)
    assert out.shape == (B, OUT_FEATURES)
    assert out.dtype == jnp.float32
    assert jnp.allclose(out, ref, atol=2e-3, rtol=2e-3), \
        "mismatch vs bf16-operand reference"

    # f32 compute path + easy_margin + non-128-aligned class count (partial
    # last class tile), checked tightly against the pure-f32 reference.
    OUT2 = 200
    w2 = jax.random.uniform(kw, (OUT2, IN_FEATURES), dtype=jnp.float32,
                            minval=-bound, maxval=bound)
    l2 = jax.random.randint(kl, (B,), 0, OUT2, dtype=jnp.int32)
    out2 = arc_margin_product(x, w2, l2, s=S, m=M, easy_margin=True,
                              compute_dtype=jnp.float32, tn=128)
    out2 = jax.block_until_ready(out2)
    ref2 = _reference(x, w2, l2, s=S, m=M, easy_margin=True,
                      compute_dtype=jnp.float32)
    assert out2.shape == (B, OUT2)
    assert jnp.allclose(out2, ref2, atol=1e-4, rtol=1e-4), \
        "mismatch vs f32 reference (easy_margin)"

    print("KERNEL_OK")
</pallas_src>

<mosaic_0001>
module attributes {stable_mosaic.version = 11 : i64} {
  func.func @kernel(%arg0: i32, %arg1: i32, %arg2: memref<8x128xbf16, #tpu.memory_space<vmem>>, %arg3: memref<128x128xbf16, #tpu.memory_space<vmem>>, %arg4: memref<8x1xi32, #tpu.memory_space<vmem>>, %arg5: memref<8x128xf32, #tpu.memory_space<vmem>>) attributes {dimension_semantics = [#tpu.dimension_semantics<parallel>, #tpu.dimension_semantics<parallel>], iteration_bounds = array<i64: 2, 1>, scalar_prefetch = 0 : i64, scratch_operands = 0 : i64, tpu.core_type = #tpu.core_type<tc>, window_params = [{transform_indices = @transform_0, window_bounds = array<i64: 8, 128>}, {transform_indices = @transform_1, window_bounds = array<i64: 128, 128>}, {transform_indices = @transform_2, window_bounds = array<i64: 8, 1>}, {transform_indices = @transform_3, window_bounds = array<i64: 8, 128>}]} {
    %c0 = arith.constant 0 : index
    %c0_0 = arith.constant 0 : index
    %0 = vector.load %arg2[%c0, %c0_0] : memref<8x128xbf16, #tpu.memory_space<vmem>>, vector<8x128xbf16>
    %c0_1 = arith.constant 0 : index
    %c0_2 = arith.constant 0 : index
    %1 = vector.load %arg3[%c0_1, %c0_2] : memref<128x128xbf16, #tpu.memory_space<vmem>>, vector<128x128xbf16>
    %cst = arith.constant dense<0.000000e+00> : vector<8x128xf32>
    %2 = tpu.matmul %0, %1, %cst {dimension_numbers = #tpu.dot_dimension_numbers<[1], [1], [0], [0], [0, 0, 1, 0], [], []>} : vector<8x128xbf16>, vector<128x128xbf16>, vector<8x128xf32> -> vector<8x128xf32>
    %3 = arith.mulf %2, %2 : vector<8x128xf32>
    %cst_3 = arith.constant 1.000000e+00 : f32
    %4 = vector.broadcast %cst_3 : f32 to vector<8x128xf32>
    %5 = arith.subf %4, %3 : vector<8x128xf32>
    %cst_4 = arith.constant 0.000000e+00 : f32
    %6 = vector.broadcast %cst_4 : f32 to vector<8x128xf32>
    %7 = arith.maximumf %5, %6 : vector<8x128xf32>
    %8 = math.sqrt %7 : vector<8x128xf32>
    %cst_5 = arith.constant 0.87758255 : f32
    %9 = vector.broadcast %cst_5 : f32 to vector<8x128xf32>
    %10 = arith.mulf %2, %9 : vector<8x128xf32>
    %cst_6 = arith.constant 0.47942555 : f32
    %11 = vector.broadcast %cst_6 : f32 to vector<8x128xf32>
    %12 = arith.mulf %8, %11 : vector<8x128xf32>
    %13 = arith.subf %10, %12 : vector<8x128xf32>
    %cst_7 = arith.constant -0.87758255 : f32
    %14 = vector.broadcast %cst_7 : f32 to vector<8x128xf32>
    %15 = arith.cmpf ogt, %2, %14 : vector<8x128xf32>
    %cst_8 = arith.constant 0.239712775 : f32
    %16 = vector.broadcast %cst_8 : f32 to vector<8x128xf32>
    %17 = arith.subf %2, %16 : vector<8x128xf32>
    %18 = arith.select %15, %13, %17 : vector<8x128xi1>, vector<8x128xf32>
    %19 = tpu.iota {dimensions = array<i32: 1>} : vector<8x128xi32>
    %c128_i32 = arith.constant 128 : i32
    %20 = arith.muli %arg0, %c128_i32 : i32
    %21 = vector.broadcast %20 : i32 to vector<8x128xi32>
    %22 = arith.addi %19, %21 : vector<8x128xi32>
    %c0_9 = arith.constant 0 : index
    %c0_10 = arith.constant 0 : index
    %23 = vector.load %arg4[%c0_9, %c0_10] : memref<8x1xi32, #tpu.memory_space<vmem>>, vector<8x1xi32>
    %24 = vector.broadcast %23 : vector<8x1xi32> to vector<8x128xi32>
    %25 = arith.cmpi eq, %22, %24 : vector<8x128xi32>
    %26 = arith.select %25, %18, %2 : vector<8x128xi1>, vector<8x128xf32>
    %cst_11 = arith.constant 3.000000e+01 : f32
    %27 = vector.broadcast %cst_11 : f32 to vector<8x128xf32>
    %28 = arith.mulf %26, %27 : vector<8x128xf32>
    %c0_12 = arith.constant 0 : index
    %c0_13 = arith.constant 0 : index
    %29 = vector.load %arg5[%c0_12, %c0_13] : memref<8x128xf32, #tpu.memory_space<vmem>>, vector<8x128xf32>
    tpu.vector_store %arg5[%c0_12, %c0_13], %28 {strides = array<i32>} : memref<8x128xf32, #tpu.memory_space<vmem>>, vector<8x128xf32>,
    return
  }
  func.func @transform_0(%arg0: i32, %arg1: i32) -> (i32, i32) {
    %c0_i32 = arith.constant 0 : i32
    %c0_i32_0 = arith.constant 0 : i32
    return %arg1, %c0_i32 : i32, i32
  }
  func.func @transform_1(%arg0: i32, %arg1: i32) -> (i32, i32) {
    %c0_i32 = arith.constant 0 : i32
    %c0_i32_0 = arith.constant 0 : i32
    return %arg0, %c0_i32 : i32, i32
  }
  func.func @transform_2(%arg0: i32, %arg1: i32) -> (i32, i32) {
    %c0_i32 = arith.constant 0 : i32
    %c0_i32_0 = arith.constant 0 : i32
    return %arg1, %c0_i32 : i32, i32
  }
  func.func @transform_3(%arg0: i32, %arg1: i32) -> (i32, i32) {
    %c0_i32 = arith.constant 0 : i32
    return %arg1, %arg0 : i32, i32
  }
}

</mosaic_0001>

<bundles_post_ra>
// kernel: tpu_custom_call.1
= control target key start
LH: loop header
LB: loop body
LE: loop exit
PB: predicated region body
PF: predicated region fallthrough
CT: control target
= control target key end

     0   :  { %8 = vsyncpa [#allocation3], 0  ;;  %s964_s0 = inlined_call_operand.vmem [shape: bf16[8,128], index: 0, kind: input, shape index: {}]   ;;  %s965_s1 = inlined_call_operand.hbm [shape: bf16[256,128], index: 1, kind: input, shape index: {}]   ;;  %s966_s2 = inlined_call_operand.vmem [shape: s32[8,1], index: 2, kind: input, shape index: {}]   ;;  %s967_s3 = inlined_call_operand.hbm [shape: f32[8,256], index: 3, kind: output, shape index: {}]  }
   0x1   :  { %10 = vsyncpa [#allocation3 + $0x1], 0 }
   0x2   :  { %11 = vsyncpa [#allocation4], 0 }
   0x3   :  { %13 = vsyncpa [#allocation4 + $0x1], 0  ;;  %s774_s12 = smov 0   ;;  %s776_s13 = smov 0  }
   0x4   :  { %s778_s14 = smov 0   ;;  %s780_s15 = smov 0  }
   0x5   :  { %s782_s16 = smov 0   ;;  %s784_s17 = smov 0  }
   0x6 LB: > { %s499_s18 = sadd.s32 4294967295, %s745_s17   ;;  %s500_s19 = sadd.s32 4294967294, %s745_s17   ;;  %s745_s17 = sphi %s784_s17, %s19_s17   ;;  %s741_s16 = sphi %s782_s16, %s982_s16   ;;  %s737_s15 = sphi %s780_s15, %s981_s15   ;;  %s733_s14 = sphi %s778_s14, %s980_s14   ;;  %s729_s13 = sphi %s776_s13, %s979_s13   ;;  %s725_s12 = sphi %s774_s12, %s978_s12  }
   0x7   : > { %s31_s20 = sadd.s32 1, %s741_s16  ;;  %s64_s21 = sadd.s32 1, %s733_s14 }
   0x8   : > { %p33_p0 = scmp.ge.s32.totalorder %s31_s20, 2  ;;  %p71_p1 = scmp.ne.s32.totalorder %s733_s14, %s729_s13 }
   0x9   : > { %p72_p2 = scmp.eq.s32.totalorder %s745_s17, 0  ;;  %p77_p3 = scmp.ne.s32.totalorder %s729_s13, %s725_s12 }
   0xa   : > { %s984_s20 = smov (%p33_p0, %s31_s20), 0  ;;  %p78_p5 = scmp.eq.s32.totalorder %s499_s18, 0 }
   0xb   : > { %p815_p4 = por %p72_p2, %p71_p1  ;;  %s61_s23 = ssub.s32 %s741_s16, %s984_s20 }
   0xc   : > { %p129_p6 = scmp.eq.s32.totalorder %s499_s18, 1  ;;  %p62_p7 = scmp.eq.s32.totalorder %s61_s23, 0 }
   0xd   : > { %p821_p8 = por %p78_p5, %p77_p3  ;;  %p135_p10 = scmp.eq.s32.totalorder %s500_s19, 1 }
   0xe   : > { %p825_p9 = por %p129_p6, %p71_p1  ;;  %p567_p13 = scmp.lt.s32.totalorder %s745_s17, 2 }
   0xf   : > { %s830_s26 = scalar_select %p62_p7, %s733_s14, %s64_s21  }
  0x10   : > { %s971_s25 = scalar_select %p825_p9, 1, 0 }
  0x11   : > { %p832_p11 = por %p135_p10, %p77_p3  ;;  %s169_s28 = sand.u32 1, %s733_s14  }
  0x12   : > { %s505_s29 = sshll.u32 %s169_s28, 6  ;;  %s525_s30 = sshll.u32 %s741_s16, 10 }
  0x13   : > { %s972_s27 = scalar_select %p832_p11, 1, 0 }
  0x14   : > { %s843_s6 = scalar_lea.hbm %s965_s1, %s525_s30  ;;  %s173_s7 = scalar_lea.vmem [#allocation2], %s505_s29 }
  0x15   : > { %s180_s8 = sshll.u32 %s173_s7, 4  ;;  %p849_p0 = pnand %p567_p13, %p815_p4  ;;  %s845_s8 = int_to_ptr.vmem [resolvable:$true] %s180_s8 }
  0x16   : > { %s854_s10 = scalar_lea.sflag [#allocation3], %s169_s28  ;;  %s633_s11 = scalar_lea.hbm %s843_s6, 1024 }
  0x17   : > { %p634_p2 = scmp.ne.s32.totalorder %s843_s6, %s633_s11  ;;  %p635_p3 = pneg %p849_p0 }
  0x18   : > { %s638_s21 = scalar_lea.hbm %s965_s1, 2048  ;;  %p639_p4 = scmp.lt.u32.totalorder %s843_s6, %s965_s1 }
  0x19   : > { %p636_p5 = pnand %p635_p3, %p634_p2  ;;  %p640_p7 = scmp.lt.u32.totalorder %s638_s21, %s633_s11 }
  0x1a   : > { %p642_p13 = scmp.lt.u32.totalorder %s633_s11, %s843_s6 }
  0x1b   : > { %p637_p6 = pneg %p636_p5  ;;  %p641_p10 = por %p640_p7, %p639_p4 }
  0x1d   : > { %p643_p12 = por %p642_p13, %p641_p10 }
  0x1f   : > { %p644_p1 = pnand %p643_p12, %p637_p6 }
  0x21   : > { %647 = shalt.err (!%p644_p1)
}
  0x22   : > { %s648_s28 = scalar_lea.vmem %s845_s8, 1024  ;;  %s747_s29 = smov [#allocation2]  }
  0x23   : > { %p649_p2 = scmp.ne.s32.totalorder %s845_s8, %s648_s28  ;;  %s653_s30 = sshll.u32 %s747_s29, 4  ;;  %s654_s30 = int_to_ptr.vmem [resolvable:$false] %s653_s30 }
  0x24   : > { %s655_s4 = scalar_lea.vmem %s654_s30, 2048  ;;  %p656_p9 = scmp.lt.s32.totalorder %s845_s8, %s654_s30 }
  0x25   : > { %p651_p5 = pnand %p649_p2, %p635_p3  ;;  %p657_p4 = scmp.lt.s32.totalorder %s655_s4, %s648_s28 }
  0x27   : > { %p652_p11 = pneg %p651_p5  ;;  %p658_p7 = por %p657_p4, %p656_p9 }
  0x29   : > { %p659_p10 = pnand %p658_p7, %p652_p11 }
  0x2b   : > { %662 = shalt.err (!%p659_p10)
}
  0x2c   : > { %s748_s5 = smov 64   ;;  %s749_s7 = smov 4  }
  0x2d   : > { %562 = dma.hbm_to_vmem [thread:$0]  (!%p849_p0), %s843_s6, 1024, %s845_s8, %s854_s10, %s748_s5, %s748_s5, %s749_s7  }
  0x2e   : > { %p188_p12 = scmp.lt.s32.totalorder %s745_s17, 3  ;;  %p974_p1 = scmp.ge.s32.totalorder %s745_s17, 1 }
  0x30   : > { %p189_p3 = pnand %p974_p1, %p188_p12 }
  0x31   : > { %s886_s11 = sand.u32 (!%p189_p3), 1, %s729_s13  }
  0x32   : > { %192 = sbr.rel (%p189_p3) target bundleno = 378 (0x17a), region = 32  ;;  %s509_s18 = sshll.u32 (!%p189_p3), %s886_s11, 6 }
  0x33   : > { %s195_s19 = scalar_lea.sflag (!%p189_p3), [#allocation3], %s886_s11  ;;  %s890_s21 = scalar_lea.vmem (!%p189_p3), [#allocation2], %s509_s18 }
  0x39   : > { %716 = dma.done.wait (%p821_p8), %s195_s19, 1024  }
  0x3a   : > { %718 = vsyncadd (%p821_p8), %s195_s19, 4294966272  ;;  %v750_v0 = vmov 0.0   ;;  %vm751_vm0 = vmmov 0   ;;  %v752_v1 = vmov 0   ;;  %v623_v2 = vld [vmem:[%s890_s21] sm:$0xff]   ;;  %v624_v3 = vld [vmem:[%s890_s21 + $0x8] sm:$0xff]   ;;  %v360_v19 = vlaneseq }
  0x3b   : > { %535 = vmatprep.subr.bf16.mxu0 %v750_v0  ;;  %551 = vmatprep.mubr.msk.bf16.mxu0 %vm751_vm0, %v750_v0  ;;  %v365_v4 = vld [vmem:[%s966_s2] sm:$0xff]  ;;  %v625_v5 = vld [vmem:[%s890_s21 + $0x10] sm:$0xff]   ;;  %v626_v6 = vld [vmem:[%s890_s21 + $0x18] sm:$0xff]   ;;  %s520_s10 = sshll.u32 %s737_s15, 7  ;;  %s510_s22 = sshll.u32 %s886_s11, 3 }
  0x3c   : > { %622 = vset.pattern.permute.xlu0 %v752_v1  ;;  %536 = vmatpush3.bf16.xpose.msra.mxu0 %v623_v2  ;;  %v627_v7 = vld [vmem:[%s890_s21 + $0x20] sm:$0xff]   ;;  %v628_v8 = vld [vmem:[%s890_s21 + $0x28] sm:$0xff]   ;;  %v629_v9 = vld [vmem:[%s890_s21 + $0x30] sm:$0xff]   ;;  %v361_v20 = vand.u32 127, %v360_v19  ;;  %v363_v22 = vstv %s520_s10  ;;  %s228_s15 = scalar_lea.vmem [#allocation5], %s510_s22  ;;  %s915_s30 = scalar_lea.hbm %s967_s3, %s520_s10 }
  0x3d   : > { %537 = vmatprep.subr.bf16.mxu0 %v750_v0  ;;  %367 = vperm.xlu0 %622, %v365_v4   ;;  %v630_v10 = vld [vmem:[%s890_s21 + $0x38] sm:$0xff]   ;;  %v239_v11 = vld [vmem:[%s964_s0] sm:$0xf]  ;;  %s389_s23 = sshll.u32 %s228_s15, 4  ;;  %s374_s4 = scalar_lea.sflag [#allocation4], %s886_s11  ;;  %s917_s23 = int_to_ptr.vmem [resolvable:$true] %s389_s23 }
  0x3e   : > { %v364_v25 = vadd.s32 %v363_v22, %v361_v20  ;;  %s663_s5 = scalar_lea.vmem %s917_s23, 128  ;;  %p975_p9 = scmp.ne.s32.totalorder %s971_s25, 0 }
  0x3f   : > { %p664_p8 = scmp.ne.s32.totalorder %s917_s23, %s663_s5  ;;  %s753_s7 = smov [#allocation5]  }
  0x40   : > { %s667_s18 = sshll.u32 %s753_s7, 4  ;;  %s668_s18 = int_to_ptr.vmem [resolvable:$false] %s667_s18 }
  0x41   : > { %p665_p11 = pnand %p664_p8, %p975_p9  ;;  %s669_s19 = scalar_lea.vmem %s668_s18, 256 }
  0x42   : > { %p670_p6 = scmp.lt.s32.totalorder %s917_s23, %s668_s18  ;;  %p671_p13 = scmp.lt.s32.totalorder %s669_s19, %s663_s5 }
  0x43   : > { %p666_p0 = pneg %p665_p11 }
  0x44   : > { %538 = vmatpush3.bf16.xpose.msra.mxu0 %v624_v3  ;;  %p672_p2 = por %p671_p13, %p670_p6 }
  0x45   : > { %539 = vmatprep.subr.bf16.mxu0 %v750_v0 }
  0x46   : > { %p673_p5 = pnand %p672_p2, %p666_p0 }
  0x4c   : > { %540 = vmatpush3.bf16.xpose.msra.mxu0 %v625_v5 }
  0x4d   : > { %541 = vmatprep.subr.bf16.mxu0 %v750_v0 }
  0x54   : > { %542 = vmatpush3.bf16.xpose.msra.mxu0 %v626_v6 }
  0x55   : > { %543 = vmatprep.subr.bf16.mxu0 %v750_v0 }
  0x5c   : > { %544 = vmatpush3.bf16.xpose.msra.mxu0 %v627_v7 }
  0x5d   : > { %545 = vmatprep.subr.bf16.mxu0 %v750_v0 }
  0x64   : > { %546 = vmatpush3.bf16.xpose.msra.mxu0 %v628_v8 }
  0x65   : > { %547 = vmatprep.subr.bf16.mxu0 %v750_v0 }
  0x6c   : > { %548 = vmatpush3.bf16.xpose.msra.mxu0 %v629_v9 }
  0x6d   : > { %549 = vmatprep.subr.bf16.mxu0 %v750_v0 }
  0x74   : > { %550 = vmatpush3.bf16.xpose.msra.mxu0 %v630_v10 }
  0x7b   : > { %552 = vmatmul.mubr.bf16.vlgmr.msra.gmra.mrb[0].mxu0 %v239_v11 }
  0xbc   : > { %v368_v27 = vpop.permute.xlu0 %367 }
  0xbd   : > { %vm369_vm3 = vcmp.eq.s32.totalorder %v364_v25, %v368_v27 }
 0x14e   : > { %v338_v12 = vpop.f32.mrb[0].mxu0 }
 0x14f   : > { %v344_v13 = vmul.f32 %v338_v12, %v338_v12  ;;  %v553_v14 = vpop.f32.mrb[1].mxu0  ;;  %v354_v29 = vmul.f32 0.87758255, %v338_v12  ;;  %v519_v31 = vadd.f32 -0.23971277, %v338_v12 }
 0x150   : > { %v341_v15 = vpop.f32.mrb[2].mxu0  ;;  %vm357_vm4 = vcmp.gt.f32.partialorder %v338_v12, -0.87758255 }
 0x151   : > { %v345_v16 = vsub.f32 1.0, %v344_v13  ;;  %v554_v17 = vpop.f32.mrb[3].mxu0 }
 0x153   : > { %v346_v18 = vmax.f32 %v345_v16, 0.0 }
 0x155   : > { %631 = vrsqrt.f32 %v346_v18  ;;  %vm349_vm1 = vcmp.eq.f32.partialorder %v346_v18, inf  ;;  %v352_v24 = vand.u32 2147483648, %v346_v18  ;;  %vm351_vm2 = vcmp.eq.f32.partialorder %v346_v18, 0.0 }
 0x15f   : > { %v632_v21 = vpop.eup %631 }
 0x160   : > { %v348_v23 = vmul.f32 %v632_v21, %v346_v18 }
 0x162   : > { %v350_v26 = vsel %vm349_vm1, %v346_v18, %v348_v23 }
 0x163   : > { %v353_v28 = vsel %vm351_vm2, %v352_v24, %v350_v26 }
 0x164   : > { %v355_v30 = vmul.f32 0.47942555, %v353_v28 }
 0x166   : > { %v356_v32 = vsub.f32 %v354_v29, %v355_v30 }
 0x168   : > { %v359_v33 = vsel %vm357_vm4, %v356_v32, %v519_v31 }
 0x169   : > { %v370_v34 = vsel %vm369_vm3, %v359_v33, %v338_v12 }
 0x16a   : > { %v371_v35 = vmul.f32 30.0, %v370_v34 }
 0x16c   : > { %372 = vst [vmem:[%s228_s15] sm:$0xff] %v371_v35 }
 0x16d   : > { %676 = shalt.err (!%p673_p5)
}
 0x16e   : > { %s677_s11 = scalar_lea.hbm %s915_s30, 128  ;;  %s681_s8 = scalar_lea.hbm %s967_s3, 256 }
 0x16f   : > { %p678_p4 = scmp.ne.s32.totalorder %s915_s30, %s677_s11  ;;  %p682_p12 = scmp.lt.u32.totalorder %s915_s30, %s967_s3 }
 0x170   : > { %p683_p1 = scmp.lt.u32.totalorder %s681_s8, %s677_s11  ;;  %p685_p8 = scmp.lt.u32.totalorder %s677_s11, %s915_s30 }
 0x171   : > { %p679_p7 = pnand %p678_p4, %p975_p9 }
 0x172   : > { %p684_p3 = por %p683_p1, %p682_p12 }
 0x173   : > { %p680_p10 = pneg %p679_p7 }
 0x174   : > { %p686_p11 = por %p685_p8, %p684_p3 }
 0x176   : > { %p687_p0 = pnand %p686_p11, %p680_p10 }
 0x178   : > { %690 = shalt.err (!%p687_p0)
}
 0x179   : > { %557 = dma.vmem_to_hbm [thread:$0]  (%p975_p9), %s917_s23, 128, %s915_s30, %s374_s4  }
 0x17a PF: > { %s401_s10 = sand.u32 1, %s725_s12   ;;  %p976_p6 = scmp.ne.s32.totalorder %s972_s27, 0 }
 0x17b   : > { %p977_p13 = scmp.ge.s32.totalorder %s745_s17, 2  ;;  %s402_s22 = scalar_lea.sflag [#allocation4], %s401_s10 }
 0x17d   : > { %p564_p2 = pnand %p977_p13, %p976_p6 }
 0x17f   : > { %720 = dma.done.wait (!%p564_p2), %s402_s22, 128  }
 0x180   : > { %722 = vsyncadd (!%p564_p2), %s402_s22, 4294967168  ;;  %s19_s17 = sadd.s32 1, %s745_s17   ;;  %s978_s12 = smov %s729_s13 }
 0x181   : > { %p16_p5 = scmp.ge.s32.totalorder %s19_s17, 4   ;;  %s979_s13 = smov %s733_s14 }
 0x182   : > { %s980_s14 = smov %s830_s26  ;;  %s981_s15 = smov %s741_s16 }
 0x183   : > { %s982_s16 = smov %s984_s20  ;;  %18 = sbr.rel (!%p16_p5) target bundleno = 6 (0x6), region = 83 }
 0x18a   :  { %407 = vsyncpa [#allocation3], 1 }
 0x18b   :  { %409 = vsyncpa [#allocation3 + $0x1], 1 }
 0x18c   :  { %410 = vsyncpa [#allocation4], 1 }
 0x18d   :  { %412 = vsyncpa [#allocation4 + $0x1], 1 }

</bundles_post_ra>
